<compile_context>
chip_gen: v7x
topology: tpu7x:2x2x1
jax: 0.10.0
libtpu: 0.0.40
codegen_flags: <defaults>
</compile_context>

<pallas_src>
import jax
import jax.numpy as jnp
from jax.experimental import pallas as pl
from jax.experimental.pallas import tpu as pltpu

_HIDDEN_PAD = 128   # hidden dim 64 zero-padded to one full vreg lane width
_LANE = 128         # lane width used for the padded w2 / b2 compute tiles


def _round_up(v, m):
    return ((v + m - 1) // m) * m


def _encoder_kernel(x_ref, w1_ref, b1_ref, w2_ref, b2_ref, o_ref):
    # Layer 1 (f32 MXU matmul, f32 accumulation): (tb, 784) @ (784, 128).
    h = jnp.dot(x_ref[...], w1_ref[...], preferred_element_type=jnp.float32)
    # Bias + ReLU on the VPU (padded hidden lanes stay exactly 0).
    h = jnp.maximum(h + b1_ref[...], 0.0)
    # Layer 2, lane-dense compute: (tb, 128) @ (128, 128); only the first
    # n_out lanes carry real data (padded w2 rows/cols are 0).
    out = jnp.dot(h, w2_ref[...], preferred_element_type=jnp.float32) + b2_ref[...]
    # Narrow (tb, n_out) store: masked vst, hidden under the x-DMA-bound
    # pipeline; cuts output HBM traffic from 512 B/row to 12 B/row.
    o_ref[...] = out[:, : o_ref.shape[1]].astype(o_ref.dtype)


def encoder_forward(x, w1, b1, w2, b2, *, block_b=1024):
    """x: (B, 784) f32 -> (B, 3) f32.   relu(x @ w1 + b1) @ w2 + b2."""
    B, d_in = x.shape
    n_hidden = w1.shape[1]
    n_out = w2.shape[1]

    # One-off wrapper-side padding of the tiny resident weights to 128 lanes.
    # Exactness preserved: padded hidden columns are 0 (+ bias 0 -> relu 0),
    # padded w2 rows/cols are 0, and padded output lanes are never stored.
    w1p = jnp.zeros((d_in, _HIDDEN_PAD), jnp.float32).at[:, :n_hidden].set(w1)
    b1p = jnp.zeros((1, _HIDDEN_PAD), jnp.float32).at[:, :n_hidden].set(b1.reshape(1, -1))
    w2p = jnp.zeros((_HIDDEN_PAD, _LANE), jnp.float32).at[:n_hidden, :n_out].set(w2)
    b2p = jnp.zeros((1, _LANE), jnp.float32).at[:, :n_out].set(b2.reshape(1, -1))

    # Batch tile: always a multiple of 8 (sublane constraint) regardless of
    # the block_b the caller passes.  No jnp.pad of x: the grid uses cdiv and
    # Pallas masks the partial last block.  Invariant that makes this exact:
    # the computation has no cross-row dependence, so garbage rows read past
    # B only feed output rows that are never written back.
    tb = _round_up(min(block_b, B), 8)
    if B >= 16 and pl.cdiv(B, tb) < 2:
        # Guarantee >=2 grid steps so the "parallel" batch axis can shard
        # across both TensorCores on v7x (negligible cost on v5e/v6e).
        tb = _round_up(pl.cdiv(B, 2), 8)
    grid = (pl.cdiv(B, tb),)

    return pl.pallas_call(
        _encoder_kernel,
        out_shape=jax.ShapeDtypeStruct((B, n_out), jnp.float32),
        grid=grid,
        in_specs=[
            pl.BlockSpec((tb, d_in), lambda i: (i, 0)),            # x: tiled over batch
            pl.BlockSpec((d_in, _HIDDEN_PAD), lambda i: (0, 0)),   # weights/biases resident
            pl.BlockSpec((1, _HIDDEN_PAD), lambda i: (0, 0)),
            pl.BlockSpec((_HIDDEN_PAD, _LANE), lambda i: (0, 0)),
            pl.BlockSpec((1, _LANE), lambda i: (0, 0)),
        ],
        out_specs=pl.BlockSpec((tb, n_out), lambda i: (i, 0)),
        compiler_params=pltpu.CompilerParams(
            # Batch axis is embarrassingly parallel -> megacore sharding.
            dimension_semantics=("parallel",),
            # Allows block_b up to ~2048 (v7x/v6e tuning) while staying within
            # every generation's physical VMEM.
            vmem_limit_bytes=32 * 1024 * 1024,
        ),
    )(x, w1p, b1p, w2p, b2p)


def init_params(key):
    """Deterministic init mimicking PyTorch nn.Linear default (U(-k, k), k=1/sqrt(fan_in))."""
    k1, k2, k3, k4 = jax.random.split(key, 4)
    fan1 = 28 * 28
    fan2 = 64
    bound1 = 1.0 / jnp.sqrt(fan1)
    bound2 = 1.0 / jnp.sqrt(fan2)
    # Stored as (in_features, out_features) so kernel does x @ W.
    w1 = jax.random.uniform(k1, (fan1, 64), jnp.float32, -bound1, bound1)
    b1 = jax.random.uniform(k2, (1, 64), jnp.float32, -bound1, bound1)
    w2 = jax.random.uniform(k3, (fan2, 3), jnp.float32, -bound2, bound2)
    b2 = jax.random.uniform(k4, (1, 3), jnp.float32, -bound2, bound2)
    return w1, b1, w2, b2


def _reference(x, w1, b1, w2, b2):
    return jnp.maximum(x @ w1 + b1, 0.0) @ w2 + b2


if __name__ == "__main__":
    key = jax.random.PRNGKey(0)
    pkey, xkey1, xkey2, xkey3 = jax.random.split(key, 4)
    w1, b1, w2, b2 = init_params(pkey)

    # Test 1: tiny batch (single grid step, block == full array).
    B = 8
    x = jax.random.normal(xkey1, (B, 28 * 28), jnp.float32)
    y = jax.block_until_ready(encoder_forward(x, w1, b1, w2, b2))
    ref = _reference(x, w1, b1, w2, b2)
    assert y.shape == (B, 3)
    assert jnp.allclose(y, ref, atol=2e-2, rtol=2e-2)

    # Test 2: batch not a multiple of the tile -> multi-step grid, resident
    # weights, masked partial last block (no jnp.pad of x, no output slice).
    B2 = 40
    x2 = jax.random.normal(xkey2, (B2, 28 * 28), jnp.float32)
    y2 = jax.block_until_ready(encoder_forward(x2, w1, b1, w2, b2, block_b=16))
    ref2 = _reference(x2, w1, b1, w2, b2)
    assert y2.shape == (B2, 3)
    assert jnp.allclose(y2, ref2, atol=2e-2, rtol=2e-2)

    # Test 3: default block_b with B small -> exercises the forced >=2-step
    # (megacore) split and its partial last block.
    B3 = 24
    x3 = jax.random.normal(xkey3, (B3, 28 * 28), jnp.float32)
    y3 = jax.block_until_ready(encoder_forward(x3, w1, b1, w2, b2))
    ref3 = _reference(x3, w1, b1, w2, b2)
    assert y3.shape == (B3, 3)
    assert jnp.allclose(y3, ref3, atol=2e-2, rtol=2e-2)

    print("KERNEL_OK")
</pallas_src>

<mosaic_0001>
module attributes {stable_mosaic.version = 11 : i64} {
  func.func @_encoder_kernel(%arg0: i32, %arg1: memref<8x784xf32, #tpu.memory_space<vmem>>, %arg2: memref<784x128xf32, #tpu.memory_space<vmem>>, %arg3: memref<1x128xf32, #tpu.memory_space<vmem>>, %arg4: memref<128x128xf32, #tpu.memory_space<vmem>>, %arg5: memref<1x128xf32, #tpu.memory_space<vmem>>, %arg6: memref<8x3xf32, #tpu.memory_space<vmem>>) attributes {dimension_semantics = [#tpu.dimension_semantics<parallel>], iteration_bounds = array<i64: 1>, scalar_prefetch = 0 : i64, scratch_operands = 0 : i64, tpu.core_type = #tpu.core_type<tc>, window_params = [{transform_indices = @transform_0, window_bounds = array<i64: 8, 784>}, {pipeline_mode = #tpu.pipeline_mode<synchronous>, transform_indices = @transform_1, window_bounds = array<i64: 784, 128>}, {pipeline_mode = #tpu.pipeline_mode<synchronous>, transform_indices = @transform_2, window_bounds = array<i64: 1, 128>}, {pipeline_mode = #tpu.pipeline_mode<synchronous>, transform_indices = @transform_3, window_bounds = array<i64: 128, 128>}, {pipeline_mode = #tpu.pipeline_mode<synchronous>, transform_indices = @transform_4, window_bounds = array<i64: 1, 128>}, {transform_indices = @transform_5, window_bounds = array<i64: 8, 3>}]} {
    %c0 = arith.constant 0 : index
    %c0_0 = arith.constant 0 : index
    %0 = vector.load %arg1[%c0, %c0_0] : memref<8x784xf32, #tpu.memory_space<vmem>>, vector<8x784xf32>
    %c0_1 = arith.constant 0 : index
    %c0_2 = arith.constant 0 : index
    %1 = vector.load %arg2[%c0_1, %c0_2] : memref<784x128xf32, #tpu.memory_space<vmem>>, vector<784x128xf32>
    %cst = arith.constant dense<0.000000e+00> : vector<8x128xf32>
    %2 = tpu.matmul %0, %1, %cst {dimension_numbers = #tpu.dot_dimension_numbers<[1], [0], [0], [1], [0, 0, 1, 1], [], []>} : vector<8x784xf32>, vector<784x128xf32>, vector<8x128xf32> -> vector<8x128xf32>
    %c0_3 = arith.constant 0 : index
    %c0_4 = arith.constant 0 : index
    %3 = vector.load %arg3[%c0_3, %c0_4] : memref<1x128xf32, #tpu.memory_space<vmem>>, vector<1x128xf32>
    %4 = vector.broadcast %3 : vector<1x128xf32> to vector<8x128xf32>
    %5 = arith.addf %2, %4 : vector<8x128xf32>
    %cst_5 = arith.constant 0.000000e+00 : f32
    %6 = vector.broadcast %cst_5 : f32 to vector<8x128xf32>
    %7 = arith.maximumf %5, %6 : vector<8x128xf32>
    %c0_6 = arith.constant 0 : index
    %c0_7 = arith.constant 0 : index
    %8 = vector.load %arg4[%c0_6, %c0_7] : memref<128x128xf32, #tpu.memory_space<vmem>>, vector<128x128xf32>
    %cst_8 = arith.constant dense<0.000000e+00> : vector<8x128xf32>
    %9 = tpu.matmul %7, %8, %cst_8 {dimension_numbers = #tpu.dot_dimension_numbers<[1], [0], [0], [1], [0, 0, 1, 1], [], []>} : vector<8x128xf32>, vector<128x128xf32>, vector<8x128xf32> -> vector<8x128xf32>
    %c0_9 = arith.constant 0 : index
    %c0_10 = arith.constant 0 : index
    %10 = vector.load %arg5[%c0_9, %c0_10] : memref<1x128xf32, #tpu.memory_space<vmem>>, vector<1x128xf32>
    %11 = vector.broadcast %10 : vector<1x128xf32> to vector<8x128xf32>
    %12 = arith.addf %9, %11 : vector<8x128xf32>
    %13 = vector.extract_strided_slice %12 {offsets = [0, 0], sizes = [8, 3], strides = [1, 1]} : vector<8x128xf32> to vector<8x3xf32>
    %c0_11 = arith.constant 0 : index
    %c0_12 = arith.constant 0 : index
    %14 = vector.load %arg6[%c0_11, %c0_12] : memref<8x3xf32, #tpu.memory_space<vmem>>, vector<8x3xf32>
    tpu.vector_store %arg6[%c0_11, %c0_12], %13 {strides = array<i32>} : memref<8x3xf32, #tpu.memory_space<vmem>>, vector<8x3xf32>,
    return
  }
  func.func @transform_0(%arg0: i32) -> (i32, i32) {
    %c0_i32 = arith.constant 0 : i32
    %c0_i32_0 = arith.constant 0 : i32
    return %arg0, %c0_i32 : i32, i32
  }
  func.func @transform_1(%arg0: i32) -> (i32, i32) {
    %c0_i32 = arith.constant 0 : i32
    %c0_i32_0 = arith.constant 0 : i32
    %c0_i32_1 = arith.constant 0 : i32
    return %c0_i32, %c0_i32_0 : i32, i32
  }
  func.func @transform_2(%arg0: i32) -> (i32, i32) {
    %c0_i32 = arith.constant 0 : i32
    %c0_i32_0 = arith.constant 0 : i32
    %c0_i32_1 = arith.constant 0 : i32
    return %c0_i32, %c0_i32_0 : i32, i32
  }
  func.func @transform_3(%arg0: i32) -> (i32, i32) {
    %c0_i32 = arith.constant 0 : i32
    %c0_i32_0 = arith.constant 0 : i32
    %c0_i32_1 = arith.constant 0 : i32
    return %c0_i32, %c0_i32_0 : i32, i32
  }
  func.func @transform_4(%arg0: i32) -> (i32, i32) {
    %c0_i32 = arith.constant 0 : i32
    %c0_i32_0 = arith.constant 0 : i32
    %c0_i32_1 = arith.constant 0 : i32
    return %c0_i32, %c0_i32_0 : i32, i32
  }
  func.func @transform_5(%arg0: i32) -> (i32, i32) {
    %c0_i32 = arith.constant 0 : i32
    %c0_i32_0 = arith.constant 0 : i32
    return %arg0, %c0_i32 : i32, i32
  }
}

</mosaic_0001>

<bundles_post_ra>
// kernel: tpu_custom_call.1
= control target key start
LH: loop header
LB: loop body
LE: loop exit
PB: predicated region body
PF: predicated region fallthrough
CT: control target
= control target key end

     0   :  { %10 = vsyncpa [#allocation3], 0  ;;  %s1026_s0 = inlined_call_operand.hbm [shape: f32[8,784], index: 0, kind: input, shape index: {}]   ;;  %s1027_s1 = inlined_call_operand.hbm [shape: f32[784,128], index: 1, kind: input, shape index: {}]   ;;  %s1028_s2 = inlined_call_operand.vmem [shape: f32[1,128], index: 2, kind: input, shape index: {}]   ;;  %s1029_s3 = inlined_call_operand.hbm [shape: f32[128,128], index: 3, kind: input, shape index: {}]   ;;  %s1030_s4 = inlined_call_operand.vmem [shape: f32[1,128], index: 4, kind: input, shape index: {}]   ;;  %s1031_s5 = inlined_call_operand.vmem [shape: f32[8,3], index: 5, kind: output, shape index: {}]  }
   0x1   :  { %11 = vsyncpa [#allocation5], 0  ;;  %s928_s18 = smov [#allocation4]   ;;  %s858_s22 = scalar_lea.hbm %s1027_s1, 12544 }
   0x2   :  { %s27_s19 = sshll.u32 %s928_s18, 4  ;;  %p859_p0 = scmp.ne.s32.totalorder %s1027_s1, %s858_s22  ;;  %s28_s19 = int_to_ptr.vmem [resolvable:$true] %s27_s19 }
   0x3   :  { %p862_p1 = scmp.lt.u32.totalorder %s858_s22, %s1027_s1 }
   0x5   :  { %p864_p2 = pnand %p862_p1, %p859_p0 }
   0x7   :  { %867 = shalt.err (!%p864_p2)
}
   0x8   :  { %s868_s27 = scalar_lea.vmem %s28_s19, 12544  ;;  %p873_p4 = scmp.lt.s32.totalorder %s28_s19, %s28_s19 }
   0x9   :  { %p869_p3 = scmp.ne.s32.totalorder %s28_s19, %s868_s27  ;;  %p874_p5 = scmp.lt.s32.totalorder %s868_s27, %s868_s27 }
   0xb   :  { %p875_p6 = por %p874_p5, %p873_p4 }
   0xd   :  { %p876_p7 = pnand %p875_p6, %p869_p3 }
   0xf   :  { %879 = shalt.err (!%p876_p7)
}
  0x10   :  { %s929_s28 = smov 128   ;;  %s930_s29 = smov 8  }
  0x11   :  { %33 = dma.hbm_to_vmem [thread:$0]  %s1027_s1, 12544, %s28_s19, [#allocation5], %s929_s28, %s929_s28, %s930_s29  }
  0x12   :  { %s931_s7 = smov [#allocation2]   ;;  %s932_s9 = smov [#allocation6]  }
  0x13   :  { %s18_s8 = sshll.u32 %s931_s7, 4  ;;  %s41_s10 = sshll.u32 %s932_s9, 4  ;;  %s19_s8 = int_to_ptr.vmem [resolvable:$true] %s18_s8  ;;  %s42_s10 = int_to_ptr.vmem [resolvable:$true] %s41_s10 }
  0x14   :  { %s880_s13 = scalar_lea.hbm %s1026_s0, 896 }
  0x15   :  { %p881_p8 = scmp.ne.s32.totalorder %s1026_s0, %s880_s13  ;;  %p884_p9 = scmp.lt.u32.totalorder %s880_s13, %s1026_s0 }
  0x17   :  { %p886_p10 = pnand %p884_p9, %p881_p8 }
  0x19   :  { %889 = shalt.err (!%p886_p10)
}
  0x1a   :  { %s890_s1 = scalar_lea.vmem %s19_s8, 896  ;;  %p895_p12 = scmp.lt.s32.totalorder %s19_s8, %s19_s8 }
  0x1b   :  { %p891_p11 = scmp.ne.s32.totalorder %s19_s8, %s890_s1  ;;  %p896_p13 = scmp.lt.s32.totalorder %s890_s1, %s890_s1 }
  0x1d   :  { %p897_p0 = por %p896_p13, %p895_p12 }
  0x1f   :  { %p898_p1 = pnand %p897_p0, %p891_p11 }
  0x21   :  { %901 = shalt.err (!%p898_p1)
}
  0x22   :  { %21 = dma.hbm_to_vmem [thread:$0]  %s1026_s0, 896, %s19_s8, [#allocation3]  }
  0x23   :  { %s902_s22 = scalar_lea.hbm %s1029_s3, 2048 }
  0x24   :  { %p903_p2 = scmp.ne.s32.totalorder %s1029_s3, %s902_s22  ;;  %p906_p3 = scmp.lt.u32.totalorder %s902_s22, %s1029_s3 }
  0x26   :  { %p908_p4 = pnand %p906_p3, %p903_p2 }
  0x28   :  { %911 = shalt.err (!%p908_p4)
}
  0x29   :  { %s912_s27 = scalar_lea.vmem %s42_s10, 2048  ;;  %p917_p6 = scmp.lt.s32.totalorder %s42_s10, %s42_s10 }
  0x2a   :  { %p913_p5 = scmp.ne.s32.totalorder %s42_s10, %s912_s27  ;;  %p918_p7 = scmp.lt.s32.totalorder %s912_s27, %s912_s27 }
  0x2c   :  { %p919_p8 = por %p918_p7, %p917_p6 }
  0x2e   :  { %p920_p9 = pnand %p919_p8, %p913_p5 }
  0x30   :  { %923 = shalt.err (!%p920_p9)
}
  0x31   :  { %47 = dma.hbm_to_vmem [thread:$0]  %s1029_s3, 2048, %s42_s10, [#allocation5], %s929_s28, %s929_s28, %s930_s29  }
  0x32   :  { %924 = dma.done.wait [#allocation3], 896  }
  0x33   :  { %925 = vsyncadd [#allocation3], 4294966400 }
  0x34   :  { %926 = dma.done.wait [#allocation5], 14592  }
  0x35   :  { %927 = vsyncadd [#allocation5], 4294952704  ;;  %v82_v0 = vld [vmem:[#allocation4 + $0x80] sm:$0xff]  ;;  %v83_v1 = vld [vmem:[#allocation4 + $0x88] sm:$0xff]  ;;  %vm934_vm0 = vmmov 0   ;;  %vm171_vm1 = vcmask 130048  }
  0x36   :  { %v66_v2 = vld [vmem:[#allocation4] sm:$0xff]  ;;  %v727_v3 = vpack.c.bf16 %v83_v1, %v82_v0  ;;  %v67_v4 = vld [vmem:[#allocation4 + $0x8] sm:$0xff]  ;;  %v84_v11 = vld [vmem:[#allocation4 + $0x90] sm:$0xff]  ;;  %vm549_vm2 = vcmask 23552  }
  0x37   :  { %v114_v5 = vld [vmem:[#allocation4 + $0x180] sm:$0xff]  ;;  %v115_v6 = vld [vmem:[#allocation4 + $0x188] sm:$0xff]  ;;  %v729_v7 = vpack.c.bf16 %v67_v4, %v66_v2  ;;  %v85_v13 = vld [vmem:[#allocation4 + $0x98] sm:$0xff] }
  0x38   :  { %v759_v8 = vpack.c.bf16 %v115_v6, %v114_v5  ;;  %v98_v9 = vld [vmem:[#allocation4 + $0x100] sm:$0xff]  ;;  %v99_v10 = vld [vmem:[#allocation4 + $0x108] sm:$0xff]  ;;  %728 = vmatprep.subr.bf16.mxu0 %v727_v3  ;;  %v68_v14 = vld [vmem:[#allocation4 + $0x10] sm:$0xff]  ;;  %v731_v16 = vpack.c.bf16 %v85_v13, %v84_v11 }
  0x39   :  { %v761_v12 = vpack.c.bf16 %v99_v10, %v98_v9  ;;  %v69_v15 = vld [vmem:[#allocation4 + $0x18] sm:$0xff]  ;;  %730 = vmatpush3.bf16.msra.mxu0 %v729_v7  ;;  %v116_v18 = vld [vmem:[#allocation4 + $0x190] sm:$0xff]  ;;  %v86_v23 = vld [vmem:[#allocation4 + $0xa0] sm:$0xff] }
  0x3a   :  { %760 = vmatprep.subr.bf16.mxu1 %v759_v8  ;;  %v733_v17 = vpack.c.bf16 %v69_v15, %v68_v14  ;;  %v117_v19 = vld [vmem:[#allocation4 + $0x198] sm:$0xff]  ;;  %v100_v20 = vld [vmem:[#allocation4 + $0x110] sm:$0xff]  ;;  %v87_v24 = vld [vmem:[#allocation4 + $0xa8] sm:$0xff]  ;;  %732 = vmatprep.subr.bf16.mxu0 %v731_v16 }
  0x3b   :  { %762 = vmatpush3.bf16.msra.mxu1 %v761_v12  ;;  %v763_v21 = vpack.c.bf16 %v117_v19, %v116_v18  ;;  %v101_v22 = vld [vmem:[#allocation4 + $0x118] sm:$0xff]  ;;  %v735_v26 = vpack.c.bf16 %v87_v24, %v86_v23  ;;  %v70_v27 = vld [vmem:[#allocation4 + $0x20] sm:$0xff]  ;;  %v71_v28 = vld [vmem:[#allocation4 + $0x28] sm:$0xff] }
  0x3c   :  { %v765_v25 = vpack.c.bf16 %v101_v22, %v100_v20  ;;  %v118_v29 = vld [vmem:[#allocation4 + $0x1a0] sm:$0xff]  ;;  %v119_v30 = vld [vmem:[#allocation4 + $0x1a8] sm:$0xff]  ;;  %v737_v33 = vpack.c.bf16 %v71_v28, %v70_v27  ;;  %v88_v35 = vld [vmem:[#allocation4 + $0xb0] sm:$0xff] }
  0x3d   :  { %764 = vmatprep.subr.bf16.mxu1 %v763_v21  ;;  %v102_v31 = vld [vmem:[#allocation4 + $0x120] sm:$0xff]  ;;  %v103_v32 = vld [vmem:[#allocation4 + $0x128] sm:$0xff]  ;;  %734 = vmatpush3.bf16.msra.mxu0 %v733_v17  ;;  %v767_v34 = vpack.c.bf16 %v119_v30, %v118_v29  ;;  %v89_v36 = vld [vmem:[#allocation4 + $0xb8] sm:$0xff] }
  0x3e   :  { %v72_v37 = vld [vmem:[#allocation4 + $0x30] sm:$0xff]  ;;  %736 = vmatprep.subr.bf16.mxu0 %v735_v26  ;;  %v769_v38 = vpack.c.bf16 %v103_v32, %v102_v31  ;;  %v739_v39 = vpack.c.bf16 %v89_v36, %v88_v35  ;;  %v73_v40 = vld [vmem:[#allocation4 + $0x38] sm:$0xff]  ;;  %v90_v46 = vld [vmem:[#allocation4 + $0xc0] sm:$0xff] }
  0x3f   :  { %766 = vmatpush3.bf16.msra.mxu1 %v765_v25  ;;  %v120_v41 = vld [vmem:[#allocation4 + $0x1b0] sm:$0xff]  ;;  %v121_v42 = vld [vmem:[#allocation4 + $0x1b8] sm:$0xff]  ;;  %v91_v47 = vld [vmem:[#allocation4 + $0xc8] sm:$0xff]  ;;  %v741_v48 = vpack.c.bf16 %v73_v40, %v72_v37 }
  0x40   :  { %768 = vmatprep.subr.bf16.mxu1 %v767_v34  ;;  %v771_v43 = vpack.c.bf16 %v121_v42, %v120_v41  ;;  %v104_v44 = vld [vmem:[#allocation4 + $0x130] sm:$0xff]  ;;  %v105_v45 = vld [vmem:[#allocation4 + $0x138] sm:$0xff]  ;;  %v122_v49 = vld [vmem:[#allocation4 + $0x1c0] sm:$0xff]  ;;  %v743_v52 = vpack.c.bf16 %v91_v47, %v90_v46 }
  0x41   :  { %738 = vmatpush3.bf16.msra.mxu0 %v737_v33  ;;  %v123_v50 = vld [vmem:[#allocation4 + $0x1c8] sm:$0xff]  ;;  %v773_v51 = vpack.c.bf16 %v105_v45, %v104_v44  ;;  %v74_v53 = vld [vmem:[#allocation4 + $0x40] sm:$0xff]  ;;  %v92_v58 = vld [vmem:[#allocation4 + $0xd0] sm:$0xff] }
  0x42   :  { %740 = vmatprep.subr.bf16.mxu0 %v739_v39  ;;  %v75_v54 = vld [vmem:[#allocation4 + $0x48] sm:$0xff]  ;;  %v106_v55 = vld [vmem:[#allocation4 + $0x140] sm:$0xff]  ;;  %v775_v56 = vpack.c.bf16 %v123_v50, %v122_v49  ;;  %v93_v59 = vld [vmem:[#allocation4 + $0xd8] sm:$0xff]  ;;  %v933_v50 = vmov 0.0|0.0  }
  0x43   :  { %770 = vmatpush3.bf16.msra.mxu1 %v769_v38  ;;  %v107_v57 = vld [vmem:[#allocation4 + $0x148] sm:$0xff]  ;;  %v124_v60 = vld [vmem:[#allocation4 + $0x1d0] sm:$0xff]  ;;  %v125_v61 = vld [vmem:[#allocation4 + $0x1d8] sm:$0xff]  ;;  %v745_v62 = vpack.c.bf16 %v75_v54, %v74_v53  ;;  %v747_v0 = vpack.c.bf16 %v93_v59, %v92_v58 }
  0x44   :  { %772 = vmatprep.subr.bf16.mxu1 %v771_v43  ;;  %v777_v63 = vpack.c.bf16 %v107_v57, %v106_v55  ;;  %v76_v1 = vld [vmem:[#allocation4 + $0x50] sm:$0xff]  ;;  %v77_v2 = vld [vmem:[#allocation4 + $0x58] sm:$0xff]  ;;  %v779_v4 = vpack.c.bf16 %v125_v61, %v124_v60  ;;  %v94_v6 = vld [vmem:[#allocation4 + $0xe0] sm:$0xff]  ;;  %v935_v60 = vmov 0.0  }
  0x45   :  { %742 = vmatpush3.bf16.msra.mxu0 %v741_v48  ;;  %v108_v3 = vld [vmem:[#allocation4 + $0x150] sm:$0xff]  ;;  %v109_v5 = vld [vmem:[#allocation4 + $0x158] sm:$0xff]  ;;  %v95_v7 = vld [vmem:[#allocation4 + $0xe8] sm:$0xff]  ;;  %v749_v10 = vpack.c.bf16 %v77_v2, %v76_v1 }
  0x46   :  { %744 = vmatprep.subr.bf16.mxu0 %v743_v52  ;;  %v126_v8 = vld [vmem:[#allocation4 + $0x1e0] sm:$0xff]  ;;  %v127_v9 = vld [vmem:[#allocation4 + $0x1e8] sm:$0xff]  ;;  %v60_v12 = vld [vmem:[#allocation2 + $0x8] sm:$0xff]  ;;  %v781_v13 = vpack.c.bf16 %v109_v5, %v108_v3  ;;  %v751_v14 = vpack.c.bf16 %v95_v7, %v94_v6 }
  0x47   :  { %774 = vmatpush3.bf16.msra.mxu1 %v773_v51  ;;  %v78_v11 = vld [vmem:[#allocation4 + $0x60] sm:$0xff]  ;;  %v79_v15 = vld [vmem:[#allocation4 + $0x68] sm:$0xff]  ;;  %v783_v18 = vpack.c.bf16 %v127_v9, %v126_v8  ;;  %v96_v19 = vld [vmem:[#allocation4 + $0xf0] sm:$0xff]  ;;  %239 = vmatprep.mubr.f32.mxu0 %v60_v12 }
  0x48   :  { %776 = vmatprep.subr.bf16.mxu1 %v775_v56  ;;  %v110_v16 = vld [vmem:[#allocation4 + $0x160] sm:$0xff]  ;;  %v111_v17 = vld [vmem:[#allocation4 + $0x168] sm:$0xff]  ;;  %v97_v20 = vld [vmem:[#allocation4 + $0xf8] sm:$0xff]  ;;  %v753_v24 = vpack.c.bf16 %v79_v15, %v78_v11 }
  0x49   :  { %746 = vmatpush3.bf16.msra.mxu0 %v745_v62  ;;  %v62_v21 = vld [vmem:[#allocation2 + $0x18] sm:$0xff]  ;;  %v128_v22 = vld [vmem:[#allocation4 + $0x1f0] sm:$0xff]  ;;  %v129_v23 = vld [vmem:[#allocation4 + $0x1f8] sm:$0xff]  ;;  %v785_v25 = vpack.c.bf16 %v111_v17, %v110_v16  ;;  %v755_v26 = vpack.c.bf16 %v97_v20, %v96_v19 }
  0x4a   :  { %748 = vmatprep.subr.bf16.mxu0 %v747_v0  ;;  %309 = vmatprep.mubr.f32.mxu1 %v62_v21  ;;  %v80_v27 = vld [vmem:[#allocation4 + $0x70] sm:$0xff]  ;;  %v81_v28 = vld [vmem:[#allocation4 + $0x78] sm:$0xff]  ;;  %v787_v30 = vpack.c.bf16 %v129_v23, %v128_v22  ;;  %v146_v32 = vld [vmem:[#allocation4 + $0x280] sm:$0xff] }
  0x4b   :  { %778 = vmatpush3.bf16.msra.mxu1 %v777_v63  ;;  %v112_v29 = vld [vmem:[#allocation4 + $0x170] sm:$0xff]  ;;  %v113_v31 = vld [vmem:[#allocation4 + $0x178] sm:$0xff]  ;;  %v147_v33 = vld [vmem:[#allocation4 + $0x288] sm:$0xff]  ;;  %v757_v34 = vpack.c.bf16 %v81_v28, %v80_v27 }
  0x4c   :  { %780 = vmatprep.subr.bf16.mxu1 %v779_v4  ;;  %v789_v35 = vpack.c.bf16 %v113_v31, %v112_v29  ;;  %v791_v36 = vpack.c.bf16 %v147_v33, %v146_v32  ;;  %v130_v37 = vld [vmem:[#allocation4 + $0x200] sm:$0xff]  ;;  %v131_v38 = vld [vmem:[#allocation4 + $0x208] sm:$0xff]  ;;  %v148_v39 = vld [vmem:[#allocation4 + $0x290] sm:$0xff] }
  0x4d   :  { %750 = vmatpush3.bf16.msra.mxu0 %v749_v10  ;;  %v149_v40 = vld [vmem:[#allocation4 + $0x298] sm:$0xff]  ;;  %v59_v41 = vld [vmem:[#allocation2] sm:$0xff]  ;;  %v793_v42 = vpack.c.bf16 %v131_v38, %v130_v37  ;;  %v132_v44 = vld [vmem:[#allocation4 + $0x210] sm:$0xff] }
  0x4e   :  { %752 = vmatprep.subr.bf16.mxu0 %v751_v14  ;;  %v61_v43 = vld [vmem:[#allocation2 + $0x10] sm:$0xff]  ;;  %v795_v45 = vpack.c.bf16 %v149_v40, %v148_v39  ;;  %v150_v47 = vld [vmem:[#allocation4 + $0x2a0] sm:$0xff]  ;;  %v151_v48 = vld [vmem:[#allocation4 + $0x2a8] sm:$0xff] }
  0x4f   :  { %782 = vmatpush3.bf16.msra.mxu1 %v781_v13  ;;  %v133_v46 = vld [vmem:[#allocation4 + $0x218] sm:$0xff]  ;;  %v64_v49 = vld [vmem:[#allocation2 + $0x28] sm:$0xff]  ;;  %v162_v51 = vld [vmem:[#allocation4 + $0x300] sm:$0xff]  ;;  %v799_v55 = vpack.c.bf16 %v151_v48, %v150_v47 }
  0x50   :  { %784 = vmatprep.subr.bf16.mxu1 %v783_v18  ;;  %v163_v52 = vld [vmem:[#allocation4 + $0x308] sm:$0xff]  ;;  %v797_v54 = vpack.c.bf16 %v133_v46, %v132_v44  ;;  %v134_v56 = vld [vmem:[#allocation4 + $0x220] sm:$0xff]  ;;  %v152_v58 = vld [vmem:[#allocation4 + $0x2b0] sm:$0xff] }
  0x51   :  { %754 = vmatpush3.bf16.msra.mxu0 %v753_v24  ;;  %v824_v53 = vpack.c.bf16 %v163_v52, %v162_v51  ;;  %v135_v57 = vld [vmem:[#allocation4 + $0x228] sm:$0xff]  ;;  %v153_v59 = vld [vmem:[#allocation4 + $0x2b8] sm:$0xff]  ;;  %v136_v0 = vld [vmem:[#allocation4 + $0x230] sm:$0xff] }
  0x52   :  { %756 = vmatprep.subr.bf16.mxu0 %v755_v26  ;;  %v65_v61 = vld [vmem:[#allocation2 + $0x30] sm:$0xff]  ;;  %v801_v62 = vpack.c.bf16 %v135_v57, %v134_v56  ;;  %v803_v63 = vpack.c.bf16 %v153_v59, %v152_v58  ;;  %v154_v2 = vld [vmem:[#allocation4 + $0x2c0] sm:$0xff]  ;;  %v155_v3 = vld [vmem:[#allocation4 + $0x2c8] sm:$0xff] }
  0x53   :  { %786 = vmatpush3.bf16.msra.mxu1 %v785_v25  ;;  %v137_v1 = vld [vmem:[#allocation4 + $0x238] sm:$0xff]  ;;  %v807_v5 = vpack.c.bf16 %v155_v3, %v154_v2  ;;  %v138_v6 = vld [vmem:[#allocation4 + $0x240] sm:$0xff]  ;;  %v139_v7 = vld [vmem:[#allocation4 + $0x248] sm:$0xff] }
  0x54   :  { %788 = vmatprep.subr.bf16.mxu1 %v787_v30  ;;  %v805_v4 = vpack.c.bf16 %v137_v1, %v136_v0  ;;  %v156_v8 = vld [vmem:[#allocation4 + $0x2d0] sm:$0xff]  ;;  %v157_v9 = vld [vmem:[#allocation4 + $0x2d8] sm:$0xff]  ;;  %v809_v10 = vpack.c.bf16 %v139_v7, %v138_v6  ;;  %v158_v14 = vld [vmem:[#allocation4 + $0x2e0] sm:$0xff] }
  0x55   :  { %758 = vmatpush3.bf16.msra.mxu0 %v757_v34  ;;  %v811_v11 = vpack.c.bf16 %v157_v9, %v156_v8  ;;  %v140_v12 = vld [vmem:[#allocation4 + $0x250] sm:$0xff]  ;;  %v141_v13 = vld [vmem:[#allocation4 + $0x258] sm:$0xff]  ;;  %v159_v15 = vld [vmem:[#allocation4 + $0x2e8] sm:$0xff] }
  0x56   :  { %792 = vmatprep.subr.bf16.mxu0 %v791_v36  ;;  %v813_v16 = vpack.c.bf16 %v141_v13, %v140_v12  ;;  %v815_v17 = vpack.c.bf16 %v159_v15, %v158_v14  ;;  %v142_v18 = vld [vmem:[#allocation4 + $0x260] sm:$0xff]  ;;  %v143_v19 = vld [vmem:[#allocation4 + $0x268] sm:$0xff]  ;;  %v160_v20 = vld [vmem:[#allocation4 + $0x2f0] sm:$0xff] }
  0x57   :  { %790 = vmatpush3.bf16.msra.mxu1 %v789_v35  ;;  %v161_v21 = vld [vmem:[#allocation4 + $0x2f8] sm:$0xff]  ;;  %v817_v22 = vpack.c.bf16 %v143_v19, %v142_v18  ;;  %v144_v24 = vld [vmem:[#allocation4 + $0x270] sm:$0xff]  ;;  %v63_v27 = vld [vmem:[#allocation2 + $0x20] sm:$0xff] }
  0x58   :  { %823 = vmatprep.subr.bf16.mxu1 %v933_v50  ;;  %240 = vmatmul.mubr.f32.vlgmr.msra.gmra.mrb[0].mxu0 %v59_v41  ;;  %v819_v23 = vpack.c.bf16 %v161_v21, %v160_v20  ;;  %v145_v25 = vld [vmem:[#allocation4 + $0x278] sm:$0xff]  ;;  %v456_v28 = vld [vmem:[#allocation6] sm:$0xff]  ;;  %v458_v30 = vld [vmem:[#allocation6 + $0x10] sm:$0xff] }
  0x59   :  { %794 = vmatpush3.bf16.msra.mxu0 %v793_v42  ;;  %379 = vmatprep.mubr.f32.mxu0 %v64_v49  ;;  %v821_v26 = vpack.c.bf16 %v145_v25, %v144_v24  ;;  %v457_v29 = vld [vmem:[#allocation6 + $0x8] sm:$0xff]  ;;  %v459_v32 = vld [vmem:[#allocation6 + $0x18] sm:$0xff]  ;;  %v460_v34 = vld [vmem:[#allocation6 + $0x20] sm:$0xff] }
  0x5a   :  { %310 = vmatmul.mubr.f32.vlgmr.msra.gmra.mrb[0].mxu1 %v61_v43  ;;  %796 = vmatprep.subr.bf16.mxu0 %v795_v45  ;;  %v827_v31 = vpack.c.bf16 %v457_v29, %v456_v28  ;;  %v830_v33 = vpack.c.bf16 %v459_v32, %v458_v30  ;;  %v461_v35 = vld [vmem:[#allocation6 + $0x28] sm:$0xff]  ;;  %v462_v37 = vld [vmem:[#allocation6 + $0x30] sm:$0xff]  ;;  %v463_v38 = vld [vmem:[#allocation6 + $0x38] sm:$0xff] }
  0x5b   :  { %825 = vmatpush3.bf16.msra.mxu1 %v824_v53  ;;  %689 = vmatprep.mubr.msk.f32.mxu1 %vm934_vm0, %v935_v60  ;;  %v833_v36 = vpack.c.bf16 %v461_v35, %v460_v34  ;;  %v836_v39 = vpack.c.bf16 %v463_v38, %v462_v37  ;;  %v464_v40 = vld [vmem:[#allocation6 + $0x40] sm:$0xff]  ;;  %v465_v41 = vld [vmem:[#allocation6 + $0x48] sm:$0xff]  ;;  %v466_v43 = vld [vmem:[#allocation6 + $0x50] sm:$0xff] }
  0x5c   :  { %826 = vmatprep.subr.bf16.mxu1 %v933_v50  ;;  %v839_v42 = vpack.c.bf16 %v465_v41, %v464_v40  ;;  %v467_v44 = vld [vmem:[#allocation6 + $0x58] sm:$0xff]  ;;  %v468_v46 = vld [vmem:[#allocation6 + $0x60] sm:$0xff]  ;;  %v469_v47 = vld [vmem:[#allocation6 + $0x68] sm:$0xff] }
  0x5d   :  { %798 = vmatpush3.bf16.msra.mxu0 %v797_v54  ;;  %v842_v45 = vpack.c.bf16 %v467_v44, %v466_v43  ;;  %v845_v48 = vpack.c.bf16 %v469_v47, %v468_v46  ;;  %v470_v49 = vld [vmem:[#allocation6 + $0x70] sm:$0xff]  ;;  %v471_v51 = vld [vmem:[#allocation6 + $0x78] sm:$0xff] }
  0x5e   :  { %800 = vmatprep.subr.bf16.mxu0 %v799_v55  ;;  %690 = vmatmul.mubr.msk.f32.vlgmr.msra.gmra.mrb[2].mxu1 %vm171_vm1, %v65_v61  ;;  %v848_v52 = vpack.c.bf16 %v471_v51, %v470_v49  ;;  %v557_v54 = vld [vmem:[%s1028_s2] ss:$0 sm:$0xff] }
  0x5f   :  { %724 = vmatprep.mubr.msk.f32.mxu1 %vm934_vm0, %v935_v60  ;;  %828 = vmatpush3.bf16.msra.mxu1 %v827_v31 }
  0x60   :  { %829 = vmatprep.subr.bf16.mxu1 %v933_v50 }
  0x61   :  { %802 = vmatpush3.bf16.msra.mxu0 %v801_v62 }
  0x62   :  { %804 = vmatprep.subr.bf16.mxu0 %v803_v63 }
  0x63   :  { %831 = vmatpush3.bf16.msra.mxu1 %v830_v33 }
  0x64   :  { %832 = vmatprep.subr.bf16.mxu1 %v933_v50 }
  0x65   :  { %806 = vmatpush3.bf16.msra.mxu0 %v805_v4 }
  0x66   :  { %808 = vmatprep.subr.bf16.mxu0 %v807_v5  ;;  %v559_v5 = vld [vmem:[%s1030_s4] ss:$0 sm:$0xff] }
  0x67   :  { %834 = vmatpush3.bf16.msra.mxu1 %v833_v36 }
  0x68   :  { %835 = vmatprep.subr.bf16.mxu1 %v933_v50 }
  0x69   :  { %810 = vmatpush3.bf16.msra.mxu0 %v809_v10 }
  0x6a   :  { %812 = vmatprep.subr.bf16.mxu0 %v811_v11 }
  0x6b   :  { %837 = vmatpush3.bf16.msra.mxu1 %v836_v39 }
  0x6c   :  { %838 = vmatprep.subr.bf16.mxu1 %v933_v50 }
  0x6d   :  { %814 = vmatpush3.bf16.msra.mxu0 %v813_v16 }
  0x6e   :  { %816 = vmatprep.subr.bf16.mxu0 %v815_v17 }
  0x6f   :  { %840 = vmatpush3.bf16.msra.mxu1 %v839_v42 }
  0x70   :  { %841 = vmatprep.subr.bf16.mxu1 %v933_v50 }
  0x71   :  { %818 = vmatpush3.bf16.msra.mxu0 %v817_v22 }
  0x72   :  { %820 = vmatprep.subr.bf16.mxu0 %v819_v23 }
  0x73   :  { %843 = vmatpush3.bf16.msra.mxu1 %v842_v45 }
  0x74   :  { %844 = vmatprep.subr.bf16.mxu1 %v933_v50 }
  0x75   :  { %822 = vmatpush3.bf16.msra.mxu0 %v821_v26 }
  0x77   :  { %846 = vmatpush3.bf16.msra.mxu1 %v845_v48 }
  0x78   :  { %380 = vmatmul.mubr.f32.vlgmr.msra.gmra.mrb[2].mxu0 %v63_v27  ;;  %847 = vmatprep.subr.bf16.mxu1 %v933_v50 }
  0x7b   :  { %849 = vmatpush3.bf16.msra.mxu1 %v848_v52 }
 0x12b   :  { %v592_v53 = vpop.f32.mrb[0].mxu0 }
 0x12c   :  { %v593_v55 = vpop.f32.mrb[1].mxu0 }
 0x12d   :  { %v627_v56 = vpop.f32.mrb[0].mxu1  ;;  %v594_v57 = vadd.f32 %v593_v55, %v592_v53 }
 0x12e   :  { %v628_v58 = vpop.f32.mrb[1].mxu1 }
 0x12f   :  { %v629_v59 = vadd.f32 %v628_v58, %v627_v56  ;;  %v242_v60 = vadd.f32 %v594_v57, %v557_v54 }
 0x131   :  { %v312_v61 = vadd.f32 %v629_v59, %v242_v60  ;;  %v451_v62 = vpop.f32.mrb[2].mxu1 }
 0x132   :  { %v691_v63 = vpop.f32.mrb[3].mxu1 }
 0x14b   :  { %v662_v0 = vpop.f32.mrb[2].mxu0 }
 0x14c   :  { %v663_v50 = vpop.f32.mrb[3].mxu0 }
 0x14d   :  { %v664_v1 = vadd.f32 %v663_v50, %v662_v0 }
 0x14f   :  { %v382_v2 = vadd.f32 %v664_v1, %v312_v61 }
 0x151   :  { %v452_v3 = vadd.f32 %v451_v62, %v382_v2 }
 0x153   :  { %v455_v4 = vmax.f32 %v452_v3, 0.0 }
 0x155   :  { %725 = vmatmul.mubr.f32.vlgmr.msra.gmra.mrb[4].mxu1 %v455_v4 }
 0x228   :  { %v545_v6 = vpop.f32.mrb[4].mxu1 }
 0x229   :  { %v546_v7 = vadd.f32 %v559_v5, %v545_v6  ;;  %v726_v8 = vpop.f32.mrb[5].mxu1 }
 0x22b   :  { %550 = vst.msk [vmem:[%s1031_s5] sm:$0xff] %vm549_vm2, %v546_v7 }
 0x22c   :  { %555 = vsyncpa [#allocation3], 1 }
 0x22d   :  { %556 = vsyncpa [#allocation5], 1 }

</bundles_post_ra>
